<compile_context>
chip_gen: v5e
topology: v5e:2x2
jax: 0.10.0
libtpu: 0.0.40
codegen_flags: <defaults>
</compile_context>

<pallas_src>
import functools

import jax
import jax.numpy as jnp
import numpy as np
from jax import lax
from jax.experimental import pallas as pl
from jax.experimental.pallas import tpu as pltpu


def _focal_loss_kernel(x_ref, y_ref, alpha_ref, loss_ref, cnt_ref,
                       acc_loss, acc_cnt, *,
                       gamma: float, ignore_index: int, n_cols: int,
                       col_tile: int):
    """One (batch b, lane-tile l) grid step.

    x_ref:     (1, C, TL)  raw logits (input dtype, cast to f32 here)
    y_ref:     (1, 1, TL)  int32 labels, lane-dense
    alpha_ref: (C, 1)      per-class weights (resident)
    loss_ref:  (1, 1, 1)   per-batch loss-sum partial (written at last tile)
    cnt_ref:   (1, 1, 1)   per-batch valid-count partial
    acc_*:     (1, TL)     f32 lane accumulators (VMEM scratch)
    """
    l = pl.program_id(1)
    n_l = pl.num_programs(1)

    @pl.when(l == 0)
    def _():
        acc_loss[...] = jnp.zeros_like(acc_loss)
        acc_cnt[...] = jnp.zeros_like(acc_cnt)

    x = x_ref[0].astype(jnp.float32)             # (C, TL)
    y = y_ref[0]                                 # (1, TL) int32
    alpha = alpha_ref[...].astype(jnp.float32)   # (C, 1)

    c, tl = x.shape

    # Tail columns of the last (partial) tile read OOB garbage; mask them out.
    col = l * col_tile + lax.broadcasted_iota(jnp.int32, (1, tl), 1)
    valid = (y != ignore_index) & (col < n_cols)             # (1, TL)

    class_iota = lax.broadcasted_iota(jnp.int32, (c, tl), 0)
    onehot = (class_iota == y) & valid                       # (C, TL)

    # Numerically-stable log_softmax over the class (sublane) axis.
    xm = jnp.max(x, axis=0, keepdims=True)                   # (1, TL)
    lse = jnp.log(jnp.sum(jnp.exp(x - xm), axis=0, keepdims=True))
    log_p = x - xm - lse                                     # (C, TL)

    # "Gather" log_p[y] and alpha[y] via the one-hot select (no real gather).
    log_pt = jnp.sum(jnp.where(onehot, log_p, 0.0), axis=0, keepdims=True)   # (1,TL)
    alpha_y = jnp.sum(jnp.where(onehot, alpha, 0.0), axis=0, keepdims=True)  # (1,TL)

    ce = -alpha_y * log_pt          # NLLLoss(weight=alpha, reduction='none')
    pt = jnp.exp(log_pt)
    base = 1.0 - pt

    if gamma == 0.0:
        focal = jnp.ones_like(base)                 # (1-pt)**0 == 1, even at pt==1
    elif float(gamma).is_integer() and 0.0 < gamma <= 8.0:
        focal = base                                # integer gamma: plain multiplies
        for _ in range(int(gamma) - 1):
            focal = focal * base
    else:
        focal = jnp.where(base > 0.0,
                          jnp.exp(gamma * jnp.log(jnp.maximum(base, 1e-30))),
                          0.0)

    loss = jnp.where(valid, focal * ce, 0.0)        # (1, TL)
    acc_loss[...] += loss
    acc_cnt[...] += valid.astype(jnp.float32)

    @pl.when(l == n_l - 1)
    def _():
        loss_ref[...] = jnp.sum(acc_loss[...], axis=-1,
                                keepdims=True).reshape(1, 1, 1)
        cnt_ref[...] = jnp.sum(acc_cnt[...], axis=-1,
                               keepdims=True).reshape(1, 1, 1)


def _choose_col_tile(n_cols, n_classes, itemsize,
                     target_bytes=2 * 1024 * 1024, max_cols=32768):
    """Lane-tile width: ~target_bytes of logits per block, multiple of 128."""
    tl = target_bytes // max(1, n_classes * itemsize)
    tl = max(128, min(tl, max_cols))
    tl = (tl // 128) * 128
    if n_cols < 128:
        return n_cols                        # block == full (small) lane dim
    return min(tl, (n_cols // 128) * 128)    # keep block <= array; tail masked


def focal_loss(x, y, alpha=None, gamma: float = 2.0, reduction: str = "mean",
               ignore_index: int = -100):
    """Pallas implementation of FocalLoss.forward.

    x: (B, C) or (B, C, d1, ..., dK) raw scores.
    y: (B,)   or (B, d1, ..., dK)   integer class labels.
    """
    if reduction not in ("mean", "sum"):
        # TODO(synk): reduction='none' returns a dynamically-shaped (unignored
        # rows only) vector in PyTorch; no clean static-shape Pallas equivalent.
        raise ValueError("only 'mean' and 'sum' reductions are supported")

    if x.ndim > 2:
        # (B, C, d1..dK) -> (B, C, L): free reshape, no HBM copy / pad / upcast.
        bsz, c = int(x.shape[0]), int(x.shape[1])
        L = 1
        for d in x.shape[2:]:
            L *= int(d)
        x3 = x.reshape(bsz, c, L)
        y3 = y.reshape(bsz, 1, L).astype(jnp.int32)
        nb = bsz
    else:
        # (B, C) -> (1, C, B): one transpose to make positions lane-dense.
        bsz, c = int(x.shape[0]), int(x.shape[1])
        L = bsz
        x3 = jnp.swapaxes(x, 0, 1).reshape(1, c, L)
        y3 = y.reshape(1, 1, L).astype(jnp.int32)
        nb = 1

    if alpha is None:
        alpha = jnp.ones((c,), dtype=jnp.float32)
    alpha2d = jnp.asarray(alpha, dtype=jnp.float32).reshape(c, 1)

    itemsize = jnp.dtype(x3.dtype).itemsize
    tl = _choose_col_tile(L, c, itemsize)
    n_l = pl.cdiv(L, tl)

    # Explicit scoped-VMEM budget: double-buffered <=2 MiB blocks plus in-kernel
    # f32 temporaries fit comfortably; 32 MiB is within v7x's 64 MiB physical
    # VMEM and is safe on v5e/v6e as well.
    vmem_limit = 32 * 1024 * 1024

    kernel = functools.partial(_focal_loss_kernel, gamma=float(gamma),
                               ignore_index=int(ignore_index),
                               n_cols=int(L), col_tile=int(tl))

    loss_parts, cnt_parts = pl.pallas_call(
        kernel,
        out_shape=(jax.ShapeDtypeStruct((nb, 1, 1), jnp.float32),
                   jax.ShapeDtypeStruct((nb, 1, 1), jnp.float32)),
        grid_spec=pltpu.PrefetchScalarGridSpec(
            num_scalar_prefetch=0,
            grid=(nb, n_l),
            in_specs=[
                pl.BlockSpec((1, c, tl), lambda b, l: (b, 0, l)),   # logits
                pl.BlockSpec((1, 1, tl), lambda b, l: (b, 0, l)),   # labels
                pl.BlockSpec((c, 1), lambda b, l: (0, 0)),          # alpha
            ],
            out_specs=(
                pl.BlockSpec((1, 1, 1), lambda b, l: (b, 0, 0)),    # loss partial
                pl.BlockSpec((1, 1, 1), lambda b, l: (b, 0, 0)),    # count partial
            ),
            scratch_shapes=[pltpu.VMEM((1, tl), jnp.float32),
                            pltpu.VMEM((1, tl), jnp.float32)],
        ),
        compiler_params=pltpu.CompilerParams(
            dimension_semantics=("parallel", "arbitrary"),
            vmem_limit_bytes=vmem_limit),
    )(x3, y3, alpha2d)

    loss_sum = jnp.sum(loss_parts)
    cnt = jnp.sum(cnt_parts)
    if reduction == "mean":
        # PyTorch returns tensor(0.0) when every label is ignored.
        return jnp.where(cnt > 0, loss_sum / jnp.maximum(cnt, 1.0),
                         jnp.float32(0.0))
    return loss_sum  # 'sum'


def _focal_loss_ref(x, y, alpha, gamma, reduction, ignore_index):
    """Pure-JAX reference mirroring the PyTorch forward."""
    if x.ndim > 2:
        c = x.shape[1]
        x = jnp.moveaxis(x, 1, -1).reshape(-1, c)
        y = y.reshape(-1)
    valid = y != ignore_index
    y_safe = jnp.where(valid, y, 0)
    log_p = jax.nn.log_softmax(x.astype(jnp.float32), axis=-1)
    log_pt = jnp.take_along_axis(log_p, y_safe[:, None], axis=-1)[:, 0]
    ce = -alpha[y_safe] * log_pt
    pt = jnp.exp(log_pt)
    loss = jnp.where(valid, (1.0 - pt) ** gamma * ce, 0.0)
    n = jnp.sum(valid)
    if reduction == "mean":
        return jnp.where(n > 0, jnp.sum(loss) / jnp.maximum(n, 1), 0.0)
    return jnp.sum(loss)


def _make_case(key, shape_x, c, ignore_index):
    kx, ky, kign = jax.random.split(key, 3)
    x = jax.random.normal(kx, shape_x, dtype=jnp.float32)
    label_shape = (shape_x[0],) + shape_x[2:] if len(shape_x) > 2 else (shape_x[0],)
    y = jax.random.randint(ky, label_shape, 0, c, dtype=jnp.int32)
    ign = jax.random.bernoulli(kign, 0.1, label_shape)
    y = jnp.where(ign, jnp.int32(ignore_index), y)
    return x, y


if __name__ == "__main__":
    key = jax.random.PRNGKey(0)
    k1, k2, k3 = jax.random.split(key, 3)

    gamma = 2.0
    ignore_index = -100
    reduction = "mean"
    C = 4
    alpha = 0.5 + 0.1 * jnp.arange(C, dtype=jnp.float32)

    cases = [
        _make_case(k1, (2, C, 16, 16), C, ignore_index),  # NCHW, exact lane tiles
        _make_case(k2, (2, C, 18, 18), C, ignore_index),  # NCHW, partial last tile
        _make_case(k3, (8, C), C, ignore_index),          # plain (B, C) logits
    ]

    for x, y in cases:
        out = focal_loss(x, y, alpha=alpha, gamma=gamma, reduction=reduction,
                         ignore_index=ignore_index)
        out = jax.block_until_ready(out)
        ref = _focal_loss_ref(x, y, alpha, gamma, reduction, ignore_index)
        np.testing.assert_allclose(np.asarray(out), np.asarray(ref),
                                   rtol=1e-4, atol=1e-5)

    print("KERNEL_OK")
</pallas_src>

<mosaic_0001>
module attributes {stable_mosaic.version = 11 : i64} {
  func.func @_focal_loss_kernel(%arg0: i32, %arg1: i32, %arg2: memref<1x4x256xf32, #tpu.memory_space<vmem>>, %arg3: memref<1x1x256xi32, #tpu.memory_space<vmem>>, %arg4: memref<4x1xf32, #tpu.memory_space<vmem>>, %arg5: memref<1x1x1xf32, #tpu.memory_space<vmem>>, %arg6: memref<1x1x1xf32, #tpu.memory_space<vmem>>, %arg7: memref<1x256xf32, #tpu.memory_space<vmem>>, %arg8: memref<1x256xf32, #tpu.memory_space<vmem>>) attributes {dimension_semantics = [#tpu.dimension_semantics<parallel>, #tpu.dimension_semantics<arbitrary>], iteration_bounds = array<i64: 2, 1>, scalar_prefetch = 0 : i64, scratch_operands = 2 : i64, tpu.core_type = #tpu.core_type<tc>, window_params = [{transform_indices = @transform_0, window_bounds = array<i64: 1, 4, 256>}, {transform_indices = @transform_1, window_bounds = array<i64: 1, 1, 256>}, {pipeline_mode = #tpu.pipeline_mode<synchronous>, transform_indices = @transform_2, window_bounds = array<i64: 4, 1>}, {transform_indices = @transform_3, window_bounds = array<i64: 1, 1, 1>}, {transform_indices = @transform_4, window_bounds = array<i64: 1, 1, 1>}]} {
    %c0_i32 = arith.constant 0 : i32
    %0 = arith.cmpi eq, %arg1, %c0_i32 : i32
    %1 = arith.extui %0 : i1 to i32
    %c0_i32_0 = arith.constant 0 : i32
    %2 = arith.cmpi ne, %1, %c0_i32_0 : i32
    scf.if %2 {
      %cst_27 = arith.constant 0.000000e+00 : f32
      %65 = vector.broadcast %cst_27 : f32 to vector<1x256xf32>
      %c0_28 = arith.constant 0 : index
      %c0_29 = arith.constant 0 : index
      %66 = vector.load %arg7[%c0_28, %c0_29] : memref<1x256xf32, #tpu.memory_space<vmem>>, vector<1x256xf32>
      tpu.vector_store %arg7[%c0_28, %c0_29], %65 {strides = array<i32>} : memref<1x256xf32, #tpu.memory_space<vmem>>, vector<1x256xf32>,
      %cst_30 = arith.constant 0.000000e+00 : f32
      %67 = vector.broadcast %cst_30 : f32 to vector<1x256xf32>
      %c0_31 = arith.constant 0 : index
      %c0_32 = arith.constant 0 : index
      %68 = vector.load %arg8[%c0_31, %c0_32] : memref<1x256xf32, #tpu.memory_space<vmem>>, vector<1x256xf32>
      tpu.vector_store %arg8[%c0_31, %c0_32], %67 {strides = array<i32>} : memref<1x256xf32, #tpu.memory_space<vmem>>, vector<1x256xf32>,
    } else {
    }
    %c0 = arith.constant 0 : index
    %c0_1 = arith.constant 0 : index
    %c0_2 = arith.constant 0 : index
    %3 = vector.load %arg2[%c0, %c0_1, %c0_2] : memref<1x4x256xf32, #tpu.memory_space<vmem>>, vector<1x4x256xf32>
    %4 = vector.shape_cast %3 : vector<1x4x256xf32> to vector<4x256xf32>
    %c0_3 = arith.constant 0 : index
    %c0_4 = arith.constant 0 : index
    %c0_5 = arith.constant 0 : index
    %5 = vector.load %arg3[%c0_3, %c0_4, %c0_5] : memref<1x1x256xi32, #tpu.memory_space<vmem>>, vector<1x1x256xi32>
    %6 = vector.shape_cast %5 : vector<1x1x256xi32> to vector<1x256xi32>
    %c0_6 = arith.constant 0 : index
    %c0_7 = arith.constant 0 : index
    %7 = vector.load %arg4[%c0_6, %c0_7] : memref<4x1xf32, #tpu.memory_space<vmem>>, vector<4x1xf32>
    %c256_i32 = arith.constant 256 : i32
    %8 = arith.muli %arg1, %c256_i32 : i32
    %9 = tpu.iota {dimensions = array<i32: 1>} : vector<1x256xi32>
    %10 = vector.broadcast %8 : i32 to vector<1x256xi32>
    %11 = arith.addi %10, %9 : vector<1x256xi32>
    %c-100_i32 = arith.constant -100 : i32
    %12 = vector.broadcast %c-100_i32 : i32 to vector<1x256xi32>
    %13 = arith.cmpi ne, %6, %12 : vector<1x256xi32>
    %c256_i32_8 = arith.constant 256 : i32
    %14 = vector.broadcast %c256_i32_8 : i32 to vector<1x256xi32>
    %15 = arith.cmpi slt, %11, %14 : vector<1x256xi32>
    %16 = arith.andi %13, %15 : vector<1x256xi1>
    %17 = tpu.iota {dimensions = array<i32: 0>} : vector<4x256xi32>
    %18 = vector.broadcast %6 : vector<1x256xi32> to vector<4x256xi32>
    %19 = arith.cmpi eq, %17, %18 : vector<4x256xi32>
    %20 = vector.broadcast %16 : vector<1x256xi1> to vector<4x256xi1>
    %21 = arith.andi %19, %20 : vector<4x256xi1>
    %cst = arith.constant dense<0xFF800000> : vector<256xf32>
    %22 = vector.multi_reduction <maximumf>, %4, %cst [0] : vector<4x256xf32> to vector<256xf32>
    %23 = vector.shape_cast %22 : vector<256xf32> to vector<1x256xf32>
    %24 = vector.broadcast %23 : vector<1x256xf32> to vector<4x256xf32>
    %25 = arith.subf %4, %24 : vector<4x256xf32>
    %26 = math.exp %25 : vector<4x256xf32>
    %cst_9 = arith.constant dense<0.000000e+00> : vector<256xf32>
    %27 = vector.multi_reduction <add>, %26, %cst_9 [0] : vector<4x256xf32> to vector<256xf32>
    %28 = vector.shape_cast %27 : vector<256xf32> to vector<1x256xf32>
    %29 = math.log %28 : vector<1x256xf32>
    %30 = vector.broadcast %23 : vector<1x256xf32> to vector<4x256xf32>
    %31 = arith.subf %4, %30 : vector<4x256xf32>
    %32 = vector.broadcast %29 : vector<1x256xf32> to vector<4x256xf32>
    %33 = arith.subf %31, %32 : vector<4x256xf32>
    %cst_10 = arith.constant 0.000000e+00 : f32
    %34 = vector.broadcast %cst_10 : f32 to vector<4x256xf32>
    %35 = arith.select %21, %33, %34 : vector<4x256xi1>, vector<4x256xf32>
    %cst_11 = arith.constant dense<0.000000e+00> : vector<256xf32>
    %36 = vector.multi_reduction <add>, %35, %cst_11 [0] : vector<4x256xf32> to vector<256xf32>
    %37 = vector.shape_cast %36 : vector<256xf32> to vector<1x256xf32>
    %cst_12 = arith.constant 0.000000e+00 : f32
    %38 = vector.shape_cast %7 : vector<4x1xf32> to vector<4x1xf32>
    %39 = vector.broadcast %38 : vector<4x1xf32> to vector<4x256xf32>
    %40 = vector.broadcast %cst_12 : f32 to vector<4x256xf32>
    %41 = arith.select %21, %39, %40 : vector<4x256xi1>, vector<4x256xf32>
    %cst_13 = arith.constant dense<0.000000e+00> : vector<256xf32>
    %42 = vector.multi_reduction <add>, %41, %cst_13 [0] : vector<4x256xf32> to vector<256xf32>
    %43 = vector.shape_cast %42 : vector<256xf32> to vector<1x256xf32>
    %cst_14 = arith.constant 0.000000e+00 : f32
    %44 = vector.broadcast %cst_14 : f32 to vector<1x256xf32>
    %45 = arith.subf %44, %43 : vector<1x256xf32>
    %46 = arith.mulf %45, %37 : vector<1x256xf32>
    %47 = math.exp %37 : vector<1x256xf32>
    %cst_15 = arith.constant 1.000000e+00 : f32
    %48 = vector.broadcast %cst_15 : f32 to vector<1x256xf32>
    %49 = arith.subf %48, %47 : vector<1x256xf32>
    %50 = arith.mulf %49, %49 : vector<1x256xf32>
    %51 = arith.mulf %50, %46 : vector<1x256xf32>
    %cst_16 = arith.constant 0.000000e+00 : f32
    %52 = vector.broadcast %cst_16 : f32 to vector<1x256xf32>
    %53 = arith.select %16, %51, %52 : vector<1x256xi1>, vector<1x256xf32>
    %c0_17 = arith.constant 0 : index
    %c0_18 = arith.constant 0 : index
    %54 = vector.load %arg7[%c0_17, %c0_18] : memref<1x256xf32, #tpu.memory_space<vmem>>, vector<1x256xf32>
    %55 = arith.addf %54, %53 : vector<1x256xf32>
    %c0_19 = arith.constant 0 : index
    %c0_20 = arith.constant 0 : index
    %56 = vector.load %arg7[%c0_19, %c0_20] : memref<1x256xf32, #tpu.memory_space<vmem>>, vector<1x256xf32>
    tpu.vector_store %arg7[%c0_19, %c0_20], %55 {strides = array<i32>} : memref<1x256xf32, #tpu.memory_space<vmem>>, vector<1x256xf32>,
    %c0_21 = arith.constant 0 : index
    %c0_22 = arith.constant 0 : index
    %57 = vector.load %arg8[%c0_21, %c0_22] : memref<1x256xf32, #tpu.memory_space<vmem>>, vector<1x256xf32>
    %58 = arith.extui %16 : vector<1x256xi1> to vector<1x256xi32>
    %59 = arith.sitofp %58 : vector<1x256xi32> to vector<1x256xf32>
    %60 = arith.addf %57, %59 : vector<1x256xf32>
    %c0_23 = arith.constant 0 : index
    %c0_24 = arith.constant 0 : index
    %61 = vector.load %arg8[%c0_23, %c0_24] : memref<1x256xf32, #tpu.memory_space<vmem>>, vector<1x256xf32>
    tpu.vector_store %arg8[%c0_23, %c0_24], %60 {strides = array<i32>} : memref<1x256xf32, #tpu.memory_space<vmem>>, vector<1x256xf32>,
    %c0_i32_25 = arith.constant 0 : i32
    %62 = arith.cmpi eq, %arg1, %c0_i32_25 : i32
    %63 = arith.extui %62 : i1 to i32
    %c0_i32_26 = arith.constant 0 : i32
    %64 = arith.cmpi ne, %63, %c0_i32_26 : i32
    scf.if %64 {
      %c0_27 = arith.constant 0 : index
      %c0_28 = arith.constant 0 : index
      %65 = vector.load %arg7[%c0_27, %c0_28] : memref<1x256xf32, #tpu.memory_space<vmem>>, vector<1x256xf32>
      %cst_29 = arith.constant dense<0.000000e+00> : vector<1xf32>
      %66 = vector.multi_reduction <add>, %65, %cst_29 [1] : vector<1x256xf32> to vector<1xf32>
      %67 = vector.shape_cast %66 : vector<1xf32> to vector<1x1xf32>
      %68 = vector.shape_cast %67 : vector<1x1xf32> to vector<1x1x1xf32>
      %c0_30 = arith.constant 0 : index
      %c0_31 = arith.constant 0 : index
      %c0_32 = arith.constant 0 : index
      %69 = vector.load %arg5[%c0_30, %c0_31, %c0_32] : memref<1x1x1xf32, #tpu.memory_space<vmem>>, vector<1x1x1xf32>
      tpu.vector_store %arg5[%c0_30, %c0_31, %c0_32], %68 {strides = array<i32>} : memref<1x1x1xf32, #tpu.memory_space<vmem>>, vector<1x1x1xf32>,
      %c0_33 = arith.constant 0 : index
      %c0_34 = arith.constant 0 : index
      %70 = vector.load %arg8[%c0_33, %c0_34] : memref<1x256xf32, #tpu.memory_space<vmem>>, vector<1x256xf32>
      %cst_35 = arith.constant dense<0.000000e+00> : vector<1xf32>
      %71 = vector.multi_reduction <add>, %70, %cst_35 [1] : vector<1x256xf32> to vector<1xf32>
      %72 = vector.shape_cast %71 : vector<1xf32> to vector<1x1xf32>
      %73 = vector.shape_cast %72 : vector<1x1xf32> to vector<1x1x1xf32>
      %c0_36 = arith.constant 0 : index
      %c0_37 = arith.constant 0 : index
      %c0_38 = arith.constant 0 : index
      %74 = vector.load %arg6[%c0_36, %c0_37, %c0_38] : memref<1x1x1xf32, #tpu.memory_space<vmem>>, vector<1x1x1xf32>
      tpu.vector_store %arg6[%c0_36, %c0_37, %c0_38], %73 {strides = array<i32>} : memref<1x1x1xf32, #tpu.memory_space<vmem>>, vector<1x1x1xf32>,
    } else {
    }
    return
  }
  func.func @transform_0(%arg0: i32, %arg1: i32) -> (i32, i32, i32) {
    %c0_i32 = arith.constant 0 : i32
    %c0_i32_0 = arith.constant 0 : i32
    return %arg0, %c0_i32, %arg1 : i32, i32, i32
  }
  func.func @transform_1(%arg0: i32, %arg1: i32) -> (i32, i32, i32) {
    %c0_i32 = arith.constant 0 : i32
    %c0_i32_0 = arith.constant 0 : i32
    return %arg0, %c0_i32, %arg1 : i32, i32, i32
  }
  func.func @transform_2(%arg0: i32, %arg1: i32) -> (i32, i32) {
    %c0_i32 = arith.constant 0 : i32
    %c0_i32_0 = arith.constant 0 : i32
    %c0_i32_1 = arith.constant 0 : i32
    return %c0_i32, %c0_i32_0 : i32, i32
  }
  func.func @transform_3(%arg0: i32, %arg1: i32) -> (i32, i32, i32) {
    %c0_i32 = arith.constant 0 : i32
    %c0_i32_0 = arith.constant 0 : i32
    %c0_i32_1 = arith.constant 0 : i32
    return %arg0, %c0_i32, %c0_i32_0 : i32, i32, i32
  }
  func.func @transform_4(%arg0: i32, %arg1: i32) -> (i32, i32, i32) {
    %c0_i32 = arith.constant 0 : i32
    %c0_i32_0 = arith.constant 0 : i32
    %c0_i32_1 = arith.constant 0 : i32
    return %arg0, %c0_i32, %c0_i32_0 : i32, i32, i32
  }
}

</mosaic_0001>

<bundles_post_ra>
// kernel: tpu_custom_call.1
= control target key start
LH: loop header
LB: loop body
LE: loop exit
PB: predicated region body
PF: predicated region fallthrough
CT: control target
= control target key end

     0   :  { %10 = vsyncpa [#allocation5], 0  ;;  %s973_s0 = inlined_call_operand.hbm [shape: f32[2,4,256], index: 0, kind: input, shape index: {}]   ;;  %s974_s1 = inlined_call_operand.vmem [shape: s32[2,1,256], index: 1, kind: input, shape index: {}]   ;;  %s975_s2 = inlined_call_operand.vmem [shape: f32[4,1], index: 2, kind: input, shape index: {}]   ;;  %s976_s3 = inlined_call_operand.vmem [shape: f32[2,1,1], index: 3, kind: output, shape index: {0}]   ;;  %s977_s4 = inlined_call_operand.vmem [shape: f32[2,1,1], index: 4, kind: output, shape index: {1}]  }
   0x1   :  { %12 = vsyncpa [#allocation5 + $0x1], 0  ;;  %s780_s15 = smov 0   ;;  %s782_s16 = smov 0  }
   0x2   :  { %s784_s17 = smov 0   ;;  %s786_s18 = smov 0  }
   0x3   :  { %s788_s19 = smov 0   ;;  %s790_s20 = smov 0  }
   0x4 LB: > { %s587_s21 = sadd.s32 4294967295, %s750_s20   ;;  %s30_s22 = sadd.s32 1, %s746_s19  ;;  %s750_s20 = sphi %s790_s20, %s18_s20   ;;  %s746_s19 = sphi %s788_s19, %s996_s19   ;;  %s742_s18 = sphi %s786_s18, %s995_s18   ;;  %s738_s17 = sphi %s784_s17, %s994_s17   ;;  %s734_s16 = sphi %s782_s16, %s993_s16   ;;  %s730_s15 = sphi %s780_s15, %s992_s15  }
   0x5   : > { %p32_p0 = scmp.ge.s32.totalorder %s30_s22, 2  ;;  %s39_s23 = sadd.s32 1, %s738_s17 }
   0x6   : > { %p46_p1 = scmp.ne.s32.totalorder %s738_s17, %s734_s16  ;;  %p47_p2 = scmp.eq.s32.totalorder %s750_s20, 0 }
   0x7   : > { %s998_s22 = smov (%p32_p0, %s30_s22), 0  ;;  %p52_p4 = scmp.ne.s32.totalorder %s734_s16, %s730_s15 }
   0x8   : > { %p816_p3 = por %p47_p2, %p46_p1  ;;  %s34_s25 = ssub.s32 %s746_s19, %s998_s22 }
   0x9   : > { %p53_p5 = scmp.eq.s32.totalorder %s587_s21, 0  ;;  %p37_p6 = scmp.eq.s32.totalorder %s34_s25, 0 }
   0xa   : > { %p607_p8 = scmp.lt.s32.totalorder %s750_s20, 2  ;;  %s180_s28 = sand.u32 1, %s738_s17  }
   0xb   : > { %p823_p7 = por %p53_p5, %p52_p4  ;;  %s600_s29 = sshll.u32 %s746_s19, 3 }
   0xc   : > { %s829_s27 = scalar_select %p37_p6, %s738_s17, %s39_s23  }
   0xd   : > { %s591_s30 = sshll.u32 %s180_s28, 3  ;;  %s191_s7 = scalar_lea.hbm %s973_s0, %s600_s29 }
   0xe   : > { %s193_s8 = sshll.u32 %s191_s7, 4  ;;  %s184_s9 = scalar_lea.vmem [#allocation4], %s591_s30  ;;  %s194_s8 = int_to_ptr.hbm [resolvable:$true] %s193_s8 }
   0xf   : > { %s195_s10 = sshll.u32 %s184_s9, 4  ;;  %p604_p9 = pnand %p607_p8, %p816_p3  ;;  %s196_s10 = int_to_ptr.vmem [resolvable:$true] %s195_s10 }
  0x10   : > { %p594_p10 = scmp.ge.s32.totalorder %s750_s20, 1  ;;  %p212_p11 = scmp.lt.s32.totalorder %s750_s20, 3 }
  0x11   : > { %s181_s11 = scalar_lea.sflag [#allocation5], %s180_s28 }
  0x12   : > { %606 = dma.hbm_to_vmem [thread:$0]  (!%p604_p9), %s194_s8, 128, %s196_s10, %s181_s11  }
  0x13   : > { %p213_p12 = pnand %p594_p10, %p212_p11 }
  0x14   : > { %s218_s12 = sand.u32 (!%p213_p12), 1, %s734_s16  }
  0x15   : > { %216 = sbr.rel (%p213_p12) target bundleno = 300 (0x12c), region = 32  ;;  %s595_s13 = sshll.u32 (!%p213_p12), %s218_s12, 3 }
  0x16   : > { %s219_s14 = scalar_lea.sflag (!%p213_p12), [#allocation5], %s218_s12  ;;  %s222_s15 = scalar_lea.vmem (!%p213_p12), [#allocation4], %s595_s13 }
  0x1a   : > { %725 = dma.done.wait (%p823_p7), %s219_s14, 128  }
  0x1b   : > { %727 = vsyncadd (%p823_p7), %s219_s14, 4294967168  ;;  %p259_p13 = scmp.lt.s32.totalorder %s742_s18, 1  ;;  %v277_v0 = vlaneseq  ;;  %v752_v1 = vmov 0   ;;  %v753_v2 = vmov 1   ;;  %vm299_vm0 = vcmask 1040384   ;;  %v283_v9 = vld [vmem:[%s222_s15] sm:$0xff] }
  0x1c   : > { %659 = vset.pattern.permute.xlu0 %v752_v1  ;;  %v298_v3 = vrot.slane %v753_v2, 7  ;;  %v754_v5 = vmov 0.0   ;;  %v285_v8 = vld [vmem:[%s975_s2] sm:$0xf]  ;;  %317 = vst [vmem:[#allocation1] ss:$2 sm:$0xff] %v283_v9 }
  0x1d   : > { %s1000_s18 = smov (!%p259_p13, %s742_s18), 1  ;;  %vm851_vm1 = vcmp.lt.s32.totalorder %v277_v0, 256  ;;  %399 = vperm.xlu0 %659, %v285_v8   ;;  %vm322_vm5 = vcmask 1043456   ;;  %v304_v59 = vshrl.u32 %v277_v0, 7  ;;  %vm463_vm12 = vcmask 0  }
  0x1e   : > { %281 = vst.msk [vmem:[#allocation2] sm:$0x3] %vm851_vm1, %v754_v5  ;;  %v300_v6 = vsel %vm299_vm0, 1, %v298_v3  ;;  %s596_s21 = sshll.u32 %s1000_s18, 1  ;;  %s272_s5 = scalar_lea.vmem %s977_s4, %s1000_s18 }
  0x1f   : > { %282 = vst.msk [vmem:[#allocation3] sm:$0x3] %vm851_vm1, %v754_v5  ;;  %s265_s25 = scalar_lea.vmem %s974_s1, %s596_s21  ;;  %vm301_vm2 = vcmp.ne.s32.totalorder %v300_v6, 0  ;;  %s269_s8 = scalar_lea.vmem %s976_s3, %s1000_s18 }
  0x20   : > { %v864_v7 = vld [vmem:[%s265_s25] sm:$0x3] }
  0x21   : > { %vm293_vm3 = vcmp.ne.s32.totalorder %v864_v7, 4294967196  ;;  %v305_v63 = vperm.slane %v864_v7, 0  ;;  %v306_v2 = vperm.slane %v864_v7, 1 }
  0x22   : > { %vm870_vm4 = vmand %vm293_vm3, %vm301_vm2 }
  0x23   : > { %v597_v11 = vsel %vm870_vm4, 1.0, %v754_v5  ;;  %v318_v14 = vld.sshfl [vmem:[#allocation1] sm:$0xff pattern:$0x75316420]  ;;  %v309_v53 = vsel %vm870_vm4, 1, %v752_v1  ;;  %vm898_vm8 = vcmp.eq.s32.totalorder %v304_v59, %v305_v63  ;;  %vm902_vm9 = vcmp.eq.s32.totalorder %v304_v59, %v306_v2 }
  0x24   : > { %v319_v15 = vld.sshfl [vmem:[#allocation1 + $0x8] sm:$0xff pattern:$0x75316420]  ;;  %v323_v16 = vsel %vm322_vm5, %v318_v14, -inf  ;;  %v310_v56 = vperm.slane %v309_v53, 0  ;;  %v311_v58 = vperm.slane %v309_v53, 1 }
  0x25   : > { %v330_v17 = vsel %vm322_vm5, %v319_v15, -inf  ;;  %v324_v18 = vrot.slane %v323_v16, 4  ;;  %v438_v62 = vld [vmem:[#allocation2] sm:$0x3] }
  0x26   : > { %v445_v12 = vld [vmem:[#allocation3] sm:$0x3]  ;;  %v331_v19 = vrot.slane %v330_v17, 4  ;;  %vm888_vm6 = vcmp.eq.s32.totalorder %v310_v56, 1  ;;  %vm894_vm7 = vcmp.eq.s32.totalorder %v311_v58, 1 }
  0x27   : > { %v447_v13 = vadd.f32 %v597_v11, %v445_v12  ;;  %v325_v20 = vmax.f32 %v323_v16, %v324_v18  ;;  %vm314_vm10 = vmand %vm898_vm8, %vm888_vm6 }
  0x28   : > { %v332_v21 = vmax.f32 %v330_v17, %v331_v19  ;;  %vm315_vm11 = vmand %vm902_vm9, %vm894_vm7 }
  0x29   : > { %448 = vst.msk [vmem:[#allocation3] sm:$0x3] %vm851_vm1, %v447_v13  ;;  %v326_v22 = vrot.slane %v325_v20, 2 }
  0x2a   : > { %v333_v23 = vrot.slane %v332_v21, 2 }
  0x2b   : > { %v327_v24 = vmax.f32 %v325_v20, %v326_v22 }
  0x2c   : > { %v334_v25 = vmax.f32 %v332_v21, %v333_v23 }
  0x2d   : > { %v328_v26 = vrot.slane %v327_v24, 1 }
  0x2e   : > { %v335_v27 = vrot.slane %v334_v25, 1 }
  0x2f   : > { %v329_v28 = vmax.f32 %v327_v24, %v328_v26 }
  0x30   : > { %v336_v29 = vmax.f32 %v334_v25, %v335_v27  ;;  %v465_v23 = vld [vmem:[#allocation3] sm:$0x3] }
  0x31   : > { %v467_v25 = vperm.slane %v465_v23, 0  ;;  %v468_v26 = vperm.slane %v465_v23, 1 }
  0x32   : > { %v339_v30 = vrot.slane %v336_v29, 4 }
  0x33   : > { %v472_v29 = vsel %vm299_vm0, %v468_v26, 0.0 }
  0x34   : > { %v340_v31 = vsel %vm322_vm5, %v329_v28, %v339_v30  ;;  %v471_v28 = vsel %vm299_vm0, %v467_v25, 0.0 }
  0x35   : > { %v342_v32 = vsub.f32 %v283_v9, %v340_v31  ;;  %v473_v30 = vadd.f32 %v472_v29, %v471_v28 }
  0x37   : > { %v343_v33 = vmul.f32 1.442695, %v342_v32  ;;  %474 = vadd.xlane.f32.xlu1 %v473_v30 }
  0x39   : > { %660 = vpow2.f32 %v343_v33 }
  0x3f   : > { %v661_v34 = vpop.eup %660 }
  0x40   : > { %346 = vst [vmem:[#allocation1] ss:$2 sm:$0xff] %v661_v34 }
  0x47   : > { %v347_v35 = vld.sshfl [vmem:[#allocation1] sm:$0xff pattern:$0x75316420]  ;;  %v348_v36 = vld.sshfl [vmem:[#allocation1 + $0x8] sm:$0xff pattern:$0x75316420] }
  0x48   : > { %v351_v37 = vsel %vm322_vm5, %v347_v35, 0.0  ;;  %v358_v38 = vsel %vm322_vm5, %v348_v36, 0.0 }
  0x49   : > { %v352_v39 = vrot.slane %v351_v37, 4  ;;  %v359_v40 = vrot.slane %v358_v38, 4 }
  0x4b   : > { %v353_v41 = vadd.f32 %v352_v39, %v351_v37  ;;  %v360_v42 = vadd.f32 %v359_v40, %v358_v38 }
  0x4d   : > { %v354_v43 = vrot.slane %v353_v41, 2  ;;  %v361_v44 = vrot.slane %v360_v42, 2 }
  0x4f   : > { %v355_v45 = vadd.f32 %v354_v43, %v353_v41  ;;  %v362_v46 = vadd.f32 %v361_v44, %v360_v42 }
  0x51   : > { %v356_v47 = vrot.slane %v355_v45, 1  ;;  %v363_v48 = vrot.slane %v362_v46, 1 }
  0x53   : > { %v357_v49 = vadd.f32 %v356_v47, %v355_v45  ;;  %v364_v50 = vadd.f32 %v363_v48, %v362_v46 }
  0x55   : > { %662 = vlog2.f32 %v357_v49 }
  0x56   : > { %664 = vlog2.f32 %v364_v50 }
  0x5b   : > { %v663_v51 = vpop.eup %662 }
  0x5c   : > { %v665_v52 = vpop.eup %664  ;;  %v366_v54 = vmul.f32 0.6931472, %v663_v51 }
  0x5d   : > { %v368_v55 = vmul.f32 0.6931472, %v665_v52 }
  0x5f   : > { %v371_v57 = vrot.slane %v368_v55, 4 }
  0x61   : > { %v372_v60 = vsel %vm322_vm5, %v366_v54, %v371_v57 }
  0x62   : > { %v374_v61 = vsub.f32 %v342_v32, %v372_v60 }
  0x64   : > { %376 = vst [vmem:[#allocation1] ss:$2 sm:$0xff] %v374_v61 }
  0x6b   : > { %v378_v5 = vld.sshfl [vmem:[#allocation1 + $0x8] sm:$0xff pattern:$0x75316420]  ;;  %v377_v6 = vld.sshfl [vmem:[#allocation1] sm:$0xff pattern:$0x75316420] }
  0x6c   : > { %v382_v7 = vsel %vm315_vm11, %v378_v5, 0.0  ;;  %v381_v8 = vsel %vm314_vm10, %v377_v6, 0.0 }
  0x6d   : > { %v390_v9 = vsel %vm322_vm5, %v382_v7, 0.0  ;;  %v383_v11 = vsel %vm322_vm5, %v381_v8, 0.0 }
  0x6e   : > { %v391_v12 = vrot.slane %v390_v9, 4  ;;  %v384_v13 = vrot.slane %v383_v11, 4 }
  0x70   : > { %v392_v14 = vadd.f32 %v391_v12, %v390_v9  ;;  %v385_v15 = vadd.f32 %v384_v13, %v383_v11 }
  0x72   : > { %v393_v16 = vrot.slane %v392_v14, 2  ;;  %v386_v17 = vrot.slane %v385_v15, 2 }
  0x74   : > { %v394_v18 = vadd.f32 %v393_v16, %v392_v14  ;;  %v387_v19 = vadd.f32 %v386_v17, %v385_v15 }
  0x76   : > { %v395_v20 = vrot.slane %v394_v18, 1  ;;  %v388_v21 = vrot.slane %v387_v19, 1 }
  0x78   : > { %v396_v22 = vadd.f32 %v395_v20, %v394_v18  ;;  %v389_v24 = vadd.f32 %v388_v21, %v387_v19 }
  0x7a   : > { %v424_v27 = vmul.f32 1.442695, %v396_v22  ;;  %v422_v32 = vmul.f32 1.442695, %v389_v24 }
  0x7c   : > { %666 = vpow2.f32 %v424_v27 }
  0x7d   : > { %668 = vpow2.f32 %v422_v32 }
  0x82   : > { %v667_v43 = vpop.eup %666 }
  0x83   : > { %v669_v46 = vpop.eup %668  ;;  %v427_v49 = vsub.f32 1.0, %v667_v43 }
  0x84   : > { %v426_v52 = vsub.f32 1.0, %v669_v46 }
  0x85   : > { %v429_v55 = vmul.f32 %v427_v49, %v427_v49 }
  0x86   : > { %v428_v58 = vmul.f32 %v426_v52, %v426_v52 }
  0x8f   : > { %v400_v31 = vpop.permute.xlu0 %399 }
  0x90   : > { %v402_v33 = vsel %vm314_vm10, %v400_v31, 0.0  ;;  %v403_v34 = vsel %vm315_vm11, %v400_v31, 0.0 }
  0x91   : > { %v404_v35 = vsel %vm322_vm5, %v402_v33, 0.0  ;;  %v411_v36 = vsel %vm322_vm5, %v403_v34, 0.0 }
  0x92   : > { %v405_v37 = vrot.slane %v404_v35, 4  ;;  %v412_v38 = vrot.slane %v411_v36, 4 }
  0x94   : > { %v406_v39 = vadd.f32 %v405_v37, %v404_v35  ;;  %v413_v40 = vadd.f32 %v412_v38, %v411_v36 }
  0x96   : > { %v407_v41 = vrot.slane %v406_v39, 2  ;;  %v414_v42 = vrot.slane %v413_v40, 2 }
  0x98   : > { %v408_v44 = vadd.f32 %v407_v41, %v406_v39  ;;  %v415_v45 = vadd.f32 %v414_v42, %v413_v40 }
  0x9a   : > { %v409_v47 = vrot.slane %v408_v44, 1  ;;  %v416_v48 = vrot.slane %v415_v45, 1 }
  0x9c   : > { %v410_v50 = vadd.f32 %v409_v47, %v408_v44  ;;  %v417_v51 = vadd.f32 %v416_v48, %v415_v45 }
  0x9e   : > { %v418_v53 = vsub.f32 0.0, %v410_v50  ;;  %v419_v54 = vsub.f32 0.0, %v417_v51 }
  0xa0   : > { %v420_v56 = vmul.f32 %v418_v53, %v389_v24  ;;  %v421_v57 = vmul.f32 %v419_v54, %v396_v22 }
  0xa2   : > { %v431_v59 = vmul.f32 %v429_v55, %v421_v57  ;;  %v430_v60 = vmul.f32 %v428_v58, %v420_v56 }
  0xa4   : > { %v434_v61 = vrot.slane %v431_v59, 7 }
  0xa6   : > { %v435_v63 = vsel %vm299_vm0, %v430_v60, %v434_v61 }
  0xa7   : > { %v437_v2 = vsel %vm870_vm4, %v435_v63, 0.0 }
  0xa8   : > { %v439_v1 = vadd.f32 %v438_v62, %v437_v2 }
  0xaa   : > { %444 = vst.msk [vmem:[#allocation2] sm:$0x3] %vm851_vm1, %v439_v1  ;;  %v475_v10 = vpop.xlane.xlu1 %474 }
  0xab   : > { %476 = vst.msk [vmem:[%s272_s5] sm:$0x1] %vm463_vm12, %v475_v10 }
  0xb1   : > { %v452_v3 = vld [vmem:[#allocation2] sm:$0x3] }
  0xb2   : > { %v454_v0 = vperm.slane %v452_v3, 0  ;;  %v455_v5 = vperm.slane %v452_v3, 1 }
  0xb4   : > { %v458_v6 = vsel %vm299_vm0, %v454_v0, 0.0  ;;  %v459_v7 = vsel %vm299_vm0, %v455_v5, 0.0 }
  0xb5   : > { %v460_v8 = vadd.f32 %v459_v7, %v458_v6 }
  0xb7   : > { %461 = vadd.xlane.f32.xlu0 %v460_v8 }
 0x12a   : > { %v462_v4 = vpop.xlane.xlu0 %461 }
 0x12b   : > { %464 = vst.msk [vmem:[%s269_s8] sm:$0x1] %vm463_vm12, %v462_v4 }
 0x12c PF: > { %s18_s20 = sadd.s32 1, %s750_s20   ;;  %s992_s15 = smov %s734_s16 }
 0x12d   : > { %p15_p0 = scmp.ge.s32.totalorder %s18_s20, 4   ;;  %s993_s16 = smov %s738_s17 }
 0x12e   : > { %s994_s17 = smov %s829_s27  ;;  %s995_s18 = smov %s746_s19 }
 0x12f   : > { %s996_s19 = smov %s998_s22  ;;  %17 = sbr.rel (!%p15_p0) target bundleno = 4 (0x4), region = 95 }
 0x134   :  { %506 = vsyncpa [#allocation5], 1 }
 0x135   :  { %508 = vsyncpa [#allocation5 + $0x1], 1 }

</bundles_post_ra>
